<compile_context>
chip_gen: v7x
topology: tpu7x:2x2x1
jax: 0.10.0
libtpu: 0.0.40
codegen_flags: <defaults>
</compile_context>

<pallas_src>
import functools
import math

import jax
import jax.numpy as jnp
from jax import lax
from jax.experimental import pallas as pl
from jax.experimental.pallas import tpu as pltpu


# ---------------------------------------------------------------------------
# Helpers
# ---------------------------------------------------------------------------
def _pick_tile(extent, preferred):
    """Largest 'nice' tile <= preferred that divides extent (else full extent)."""
    if extent <= preferred:
        return extent
    for t in (preferred, 512, 256, 128, 64, 32, 16, 8):
        if t <= preferred and extent % t == 0:
            return t
    return extent


def _pick_heads_per_block(num_heads, head_dim):
    """Heads folded per attention block: aim for ~256 output lanes (>=128)."""
    target = max(1, 256 // head_dim)
    best = 1
    for cand in range(1, num_heads + 1):
        if cand <= target and num_heads % cand == 0:
            best = cand
    return best


# ---------------------------------------------------------------------------
# Kernel 1: fused Q/K/V projection   q,k,v = x @ W{q,k,v} + b{q,k,v}
#   - operands fed to the MXU in their stored dtype, f32 accumulation
#   - 1/sqrt(d) folded into the Q epilogue (saves a per-step VPU mul later)
# ---------------------------------------------------------------------------
def qkv_proj_kernel(x_ref, wq_ref, bq_ref, wk_ref, bk_ref, wv_ref, bv_ref,
                    q_ref, k_ref, v_ref, *, q_scale):
    x = x_ref[...]                                         # (tm, H)

    def proj(w_ref, b_ref, o_ref, scale=None):
        y = jnp.dot(x, w_ref[...], preferred_element_type=jnp.float32)
        y = y + b_ref[...].astype(jnp.float32)             # (1, H) broadcast
        if scale is not None:
            y = y * scale
        o_ref[...] = y.astype(o_ref.dtype)

    proj(wq_ref, bq_ref, q_ref, q_scale)                   # scale folded into q
    proj(wk_ref, bk_ref, k_ref)
    proj(wv_ref, bv_ref, v_ref)


# ---------------------------------------------------------------------------
# Kernel 2: flash-style multi-head attention, heads folded into the block.
#   grid = (B, num_head_groups, S//tq, S//tkv); kv axis (last) is the reduction.
#   q/k/v/out blocks are (tq|tkv, hb*d) column slabs of the (B, S, H) tensors,
#   so all HBM reads/writes are lane-dense; per-head work uses static lane
#   slices inside the block.
# ---------------------------------------------------------------------------
def flash_mha_kernel(*refs, head_dim, heads_per_block, use_mask):
    if use_mask:
        q_ref, k_ref, v_ref, mask_ref, o_ref, m_sc, l_sc, acc_sc = refs
    else:
        q_ref, k_ref, v_ref, o_ref, m_sc, l_sc, acc_sc = refs
        mask_ref = None

    d = head_dim
    hb = heads_per_block
    ki = pl.program_id(3)

    @pl.when(ki == 0)
    def _init():
        m_sc[...] = jnp.full_like(m_sc, -jnp.inf)
        l_sc[...] = jnp.zeros_like(l_sc)
        acc_sc[...] = jnp.zeros_like(acc_sc)

    if use_mask:
        mask = mask_ref[...].astype(jnp.float32)           # (1, tkv)

    # Static unroll over the heads folded into this block.
    for h in range(hb):
        lo, hi = h * d, (h + 1) * d
        qh = q_ref[:, lo:hi]                               # (tq,  d)
        kh = k_ref[:, lo:hi]                               # (tkv, d)
        # scores = q @ k^T (contract on d); scale already folded into q.
        s = lax.dot_general(qh, kh, (((1,), (1,)), ((), ())),
                            preferred_element_type=jnp.float32)   # (tq, tkv)
        if use_mask:
            s = s + mask                                   # additive mask

        m_prev = m_sc[h, :, :]                             # (tq, 1)
        m_new = jnp.maximum(m_prev, s.max(axis=-1, keepdims=True))
        alpha = jnp.exp(m_prev - m_new)
        p = jnp.exp(s - m_new)                             # (tq, tkv) f32
        l_sc[h, :, :] = alpha * l_sc[h, :, :] + p.sum(axis=-1, keepdims=True)
        acc_sc[h, :, :] = alpha * acc_sc[h, :, :] + jnp.dot(
            p.astype(v_ref.dtype), v_ref[:, lo:hi],
            preferred_element_type=jnp.float32)
        m_sc[h, :, :] = m_new

    @pl.when(ki == pl.num_programs(3) - 1)
    def _finalize():
        for h in range(hb):
            lo, hi = h * d, (h + 1) * d
            l = l_sc[h, :, :]
            inv = pl.reciprocal(l, approx=True)            # EUP slot
            inv = inv * (2.0 - l * inv)                    # one Newton step
            o_ref[:, lo:hi] = (acc_sc[h, :, :] * inv).astype(o_ref.dtype)


# ---------------------------------------------------------------------------
# Wrapper
# ---------------------------------------------------------------------------
def bert_self_attention(hidden_states, attention_mask, params,
                        num_attention_heads, *, use_attention_mask=True,
                        tm=None, tq=None, tkv=None, heads_per_block=None):
    """hidden_states: [B, S, H]; attention_mask: additive, [B, 1, 1, S]."""
    B, S, H = hidden_states.shape
    nh = num_attention_heads
    assert H % nh == 0
    d = H // nh
    M = B * S
    dtype = hidden_states.dtype
    scale = 1.0 / math.sqrt(d)

    # ---- Kernel 1: fused Q/K/V projection, tiled over rows of B*S ----------
    if tm is None:
        tm = _pick_tile(M, 512)
    assert M % tm == 0, "pad B*S to a multiple of the row tile"

    x2d = hidden_states.reshape(M, H)
    row_spec = pl.BlockSpec((tm, H), lambda i: (i, 0))
    w_spec = pl.BlockSpec((H, H), lambda i: (0, 0))        # resident weights
    b_spec = pl.BlockSpec((1, H), lambda i: (0, 0))

    # Explicit VMEM budget: resident (double-buffer-allocated) weights/biases
    # plus the pipelined x and q/k/v row tiles.  Keeps BERT-size H within the
    # v5e 16 MiB scoped default problem zone and below v7x's 64 MiB physical.
    itemsize = jnp.dtype(dtype).itemsize
    vmem_est = (2 * (3 * H * H + 3 * H) + 2 * 4 * tm * H) * itemsize
    vmem_limit = int(min(max(1.3 * vmem_est, 16 * 2**20), 64 * 2**20))

    q2d, k2d, v2d = pl.pallas_call(
        functools.partial(qkv_proj_kernel, q_scale=scale),
        out_shape=tuple(jax.ShapeDtypeStruct((M, H), dtype) for _ in range(3)),
        grid_spec=pltpu.PrefetchScalarGridSpec(
            num_scalar_prefetch=0,
            grid=(M // tm,),
            in_specs=[row_spec, w_spec, b_spec, w_spec, b_spec, w_spec, b_spec],
            out_specs=[row_spec, row_spec, row_spec],
        ),
        compiler_params=pltpu.CompilerParams(
            dimension_semantics=("parallel",),
            vmem_limit_bytes=vmem_limit),
    )(x2d, params["wq"], params["bq"], params["wk"], params["bk"],
      params["wv"], params["bv"])

    # q/k/v stay in merged-head (B, S, H) layout -> no split-head transposes.
    q3 = q2d.reshape(B, S, H)
    k3 = k2d.reshape(B, S, H)
    v3 = v2d.reshape(B, S, H)

    # ---- Kernel 2: flash attention with folded heads ------------------------
    if heads_per_block is None:
        hb = _pick_heads_per_block(nh, d)
    else:
        hb = heads_per_block
    assert nh % hb == 0
    n_groups = nh // hb
    hbd = hb * d

    pref = 256                                     # v6e / v7x: 256-wide MXU
    try:
        kind = jax.devices()[0].device_kind.lower()
        if ("v5e" in kind) or ("v5 lite" in kind) or ("v5lite" in kind):
            pref = 128                             # v5e: 128 tiles fill the MXU
    except Exception:
        pass
    if tq is None:
        tq = _pick_tile(S, pref)
    if tkv is None:
        tkv = _pick_tile(S, pref)
    assert S % tq == 0 and S % tkv == 0, "pad S to a multiple of the tiles"

    grid = (B, n_groups, S // tq, S // tkv)

    in_specs = [
        pl.BlockSpec((None, tq, hbd), lambda b, g, qi, ki: (b, qi, g)),    # q
        pl.BlockSpec((None, tkv, hbd), lambda b, g, qi, ki: (b, ki, g)),   # k
        pl.BlockSpec((None, tkv, hbd), lambda b, g, qi, ki: (b, ki, g)),   # v
    ]
    args = [q3, k3, v3]
    if use_attention_mask:
        mask3 = attention_mask.reshape(B, 1, S).astype(jnp.float32)
        in_specs.append(
            pl.BlockSpec((None, 1, tkv), lambda b, g, qi, ki: (b, 0, ki)))
        args.append(mask3)

    ctx = pl.pallas_call(
        functools.partial(flash_mha_kernel, head_dim=d, heads_per_block=hb,
                          use_mask=use_attention_mask),
        out_shape=jax.ShapeDtypeStruct((B, S, H), dtype),  # merged heads
        grid_spec=pltpu.PrefetchScalarGridSpec(
            num_scalar_prefetch=0,
            grid=grid,
            in_specs=in_specs,
            out_specs=pl.BlockSpec((None, tq, hbd),
                                   lambda b, g, qi, ki: (b, qi, g)),
            scratch_shapes=[
                pltpu.VMEM((hb, tq, 1), jnp.float32),   # running max per head
                pltpu.VMEM((hb, tq, 1), jnp.float32),   # running denom per head
                pltpu.VMEM((hb, tq, d), jnp.float32),   # output accumulators
            ],
        ),
        compiler_params=pltpu.CompilerParams(
            dimension_semantics=("parallel", "parallel", "parallel",
                                 "arbitrary")),
    )(*args)

    return ctx                                     # already (B, S, H)


# ---------------------------------------------------------------------------
# Pure-JAX reference
# ---------------------------------------------------------------------------
def _reference(hidden_states, attention_mask, params, num_attention_heads,
               use_attention_mask=True):
    B, S, H = hidden_states.shape
    nh = num_attention_heads
    d = H // nh
    hp = lax.Precision.HIGHEST
    x = hidden_states.astype(jnp.float32)
    q = jnp.dot(x, params["wq"], precision=hp) + params["bq"][0]
    k = jnp.dot(x, params["wk"], precision=hp) + params["bk"][0]
    v = jnp.dot(x, params["wv"], precision=hp) + params["bv"][0]

    def split(t):
        return t.reshape(B, S, nh, d).transpose(0, 2, 1, 3)

    q, k, v = split(q), split(k), split(v)
    s = jnp.einsum("bhqd,bhkd->bhqk", q, k, precision=hp) / math.sqrt(d)
    if use_attention_mask:
        s = s + attention_mask                      # [B, 1, 1, S] broadcast
    p = jax.nn.softmax(s, axis=-1)
    ctx = jnp.einsum("bhqk,bhkd->bhqd", p, v, precision=hp)
    return ctx.transpose(0, 2, 1, 3).reshape(B, S, H)


if __name__ == "__main__":
    # Small BERT-like config: hidden_size=32, num_attention_heads=4, seq=8
    B, S, H, nh = 2, 8, 32, 4

    key = jax.random.PRNGKey(0)
    ks = jax.random.split(key, 8)

    params = {
        # torch Linear weight is (out, in); we store (in, out) and use x @ W.
        "wq": jax.random.normal(ks[0], (H, H), jnp.float32) * 0.05,
        "bq": jax.random.normal(ks[1], (1, H), jnp.float32) * 0.05,
        "wk": jax.random.normal(ks[2], (H, H), jnp.float32) * 0.05,
        "bk": jax.random.normal(ks[3], (1, H), jnp.float32) * 0.05,
        "wv": jax.random.normal(ks[4], (H, H), jnp.float32) * 0.05,
        "bv": jax.random.normal(ks[5], (1, H), jnp.float32) * 0.05,
    }
    hidden_states = jax.random.normal(ks[6], (B, S, H), jnp.float32)

    # Additive attention mask [B, 1, 1, S]: 0 = attend, -10000 = masked.
    lengths = jnp.array([S, S - 2])
    key_pos = jnp.arange(S)[None, :]
    attention_mask = jnp.where(key_pos < lengths[:, None], 0.0, -10000.0)
    attention_mask = attention_mask.reshape(B, 1, 1, S).astype(jnp.float32)

    # With additive mask
    ctx = bert_self_attention(hidden_states, attention_mask, params, nh)
    ctx = jax.block_until_ready(ctx)
    ref = _reference(hidden_states, attention_mask, params, nh)
    assert ctx.shape == (B, S, H), ctx.shape
    max_err = float(jnp.max(jnp.abs(ctx - ref)))
    assert jnp.allclose(ctx, ref, atol=2e-3, rtol=2e-3), max_err

    # Without mask (specialized kernel path)
    ctx_nm = bert_self_attention(hidden_states, None, params, nh,
                                 use_attention_mask=False)
    ctx_nm = jax.block_until_ready(ctx_nm)
    ref_nm = _reference(hidden_states, None, params, nh,
                        use_attention_mask=False)
    max_err_nm = float(jnp.max(jnp.abs(ctx_nm - ref_nm)))
    assert jnp.allclose(ctx_nm, ref_nm, atol=2e-3, rtol=2e-3), max_err_nm

    print("KERNEL_OK")
</pallas_src>

<mosaic_0001>
module attributes {stable_mosaic.version = 11 : i64} {
  func.func @qkv_proj_kernel(%arg0: i32, %arg1: memref<16x32xf32, #tpu.memory_space<vmem>>, %arg2: memref<32x32xf32, #tpu.memory_space<vmem>>, %arg3: memref<1x32xf32, #tpu.memory_space<vmem>>, %arg4: memref<32x32xf32, #tpu.memory_space<vmem>>, %arg5: memref<1x32xf32, #tpu.memory_space<vmem>>, %arg6: memref<32x32xf32, #tpu.memory_space<vmem>>, %arg7: memref<1x32xf32, #tpu.memory_space<vmem>>, %arg8: memref<16x32xf32, #tpu.memory_space<vmem>>, %arg9: memref<16x32xf32, #tpu.memory_space<vmem>>, %arg10: memref<16x32xf32, #tpu.memory_space<vmem>>) attributes {dimension_semantics = [#tpu.dimension_semantics<parallel>], iteration_bounds = array<i64: 1>, scalar_prefetch = 0 : i64, scratch_operands = 0 : i64, tpu.core_type = #tpu.core_type<tc>, window_params = [{transform_indices = @transform_0, window_bounds = array<i64: 16, 32>}, {pipeline_mode = #tpu.pipeline_mode<synchronous>, transform_indices = @transform_1, window_bounds = array<i64: 32, 32>}, {pipeline_mode = #tpu.pipeline_mode<synchronous>, transform_indices = @transform_2, window_bounds = array<i64: 1, 32>}, {pipeline_mode = #tpu.pipeline_mode<synchronous>, transform_indices = @transform_3, window_bounds = array<i64: 32, 32>}, {pipeline_mode = #tpu.pipeline_mode<synchronous>, transform_indices = @transform_4, window_bounds = array<i64: 1, 32>}, {pipeline_mode = #tpu.pipeline_mode<synchronous>, transform_indices = @transform_5, window_bounds = array<i64: 32, 32>}, {pipeline_mode = #tpu.pipeline_mode<synchronous>, transform_indices = @transform_6, window_bounds = array<i64: 1, 32>}, {transform_indices = @transform_7, window_bounds = array<i64: 16, 32>}, {transform_indices = @transform_8, window_bounds = array<i64: 16, 32>}, {transform_indices = @transform_9, window_bounds = array<i64: 16, 32>}]} {
    %c0 = arith.constant 0 : index
    %c0_0 = arith.constant 0 : index
    %0 = vector.load %arg1[%c0, %c0_0] : memref<16x32xf32, #tpu.memory_space<vmem>>, vector<16x32xf32>
    %c0_1 = arith.constant 0 : index
    %c0_2 = arith.constant 0 : index
    %1 = vector.load %arg2[%c0_1, %c0_2] : memref<32x32xf32, #tpu.memory_space<vmem>>, vector<32x32xf32>
    %cst = arith.constant dense<0.000000e+00> : vector<16x32xf32>
    %2 = tpu.matmul %0, %1, %cst {dimension_numbers = #tpu.dot_dimension_numbers<[1], [0], [0], [1], [0, 0, 1, 1], [], []>} : vector<16x32xf32>, vector<32x32xf32>, vector<16x32xf32> -> vector<16x32xf32>
    %c0_3 = arith.constant 0 : index
    %c0_4 = arith.constant 0 : index
    %3 = vector.load %arg3[%c0_3, %c0_4] : memref<1x32xf32, #tpu.memory_space<vmem>>, vector<1x32xf32>
    %4 = vector.broadcast %3 : vector<1x32xf32> to vector<16x32xf32>
    %5 = arith.addf %2, %4 : vector<16x32xf32>
    %cst_5 = arith.constant 0.353553385 : f32
    %6 = vector.broadcast %cst_5 : f32 to vector<16x32xf32>
    %7 = arith.mulf %5, %6 : vector<16x32xf32>
    %c0_6 = arith.constant 0 : index
    %c0_7 = arith.constant 0 : index
    %8 = vector.load %arg8[%c0_6, %c0_7] : memref<16x32xf32, #tpu.memory_space<vmem>>, vector<16x32xf32>
    tpu.vector_store %arg8[%c0_6, %c0_7], %7 {strides = array<i32>} : memref<16x32xf32, #tpu.memory_space<vmem>>, vector<16x32xf32>,
    %c0_8 = arith.constant 0 : index
    %c0_9 = arith.constant 0 : index
    %9 = vector.load %arg4[%c0_8, %c0_9] : memref<32x32xf32, #tpu.memory_space<vmem>>, vector<32x32xf32>
    %cst_10 = arith.constant dense<0.000000e+00> : vector<16x32xf32>
    %10 = tpu.matmul %0, %9, %cst_10 {dimension_numbers = #tpu.dot_dimension_numbers<[1], [0], [0], [1], [0, 0, 1, 1], [], []>} : vector<16x32xf32>, vector<32x32xf32>, vector<16x32xf32> -> vector<16x32xf32>
    %c0_11 = arith.constant 0 : index
    %c0_12 = arith.constant 0 : index
    %11 = vector.load %arg5[%c0_11, %c0_12] : memref<1x32xf32, #tpu.memory_space<vmem>>, vector<1x32xf32>
    %12 = vector.broadcast %11 : vector<1x32xf32> to vector<16x32xf32>
    %13 = arith.addf %10, %12 : vector<16x32xf32>
    %c0_13 = arith.constant 0 : index
    %c0_14 = arith.constant 0 : index
    %14 = vector.load %arg9[%c0_13, %c0_14] : memref<16x32xf32, #tpu.memory_space<vmem>>, vector<16x32xf32>
    tpu.vector_store %arg9[%c0_13, %c0_14], %13 {strides = array<i32>} : memref<16x32xf32, #tpu.memory_space<vmem>>, vector<16x32xf32>,
    %c0_15 = arith.constant 0 : index
    %c0_16 = arith.constant 0 : index
    %15 = vector.load %arg6[%c0_15, %c0_16] : memref<32x32xf32, #tpu.memory_space<vmem>>, vector<32x32xf32>
    %cst_17 = arith.constant dense<0.000000e+00> : vector<16x32xf32>
    %16 = tpu.matmul %0, %15, %cst_17 {dimension_numbers = #tpu.dot_dimension_numbers<[1], [0], [0], [1], [0, 0, 1, 1], [], []>} : vector<16x32xf32>, vector<32x32xf32>, vector<16x32xf32> -> vector<16x32xf32>
    %c0_18 = arith.constant 0 : index
    %c0_19 = arith.constant 0 : index
    %17 = vector.load %arg7[%c0_18, %c0_19] : memref<1x32xf32, #tpu.memory_space<vmem>>, vector<1x32xf32>
    %18 = vector.broadcast %17 : vector<1x32xf32> to vector<16x32xf32>
    %19 = arith.addf %16, %18 : vector<16x32xf32>
    %c0_20 = arith.constant 0 : index
    %c0_21 = arith.constant 0 : index
    %20 = vector.load %arg10[%c0_20, %c0_21] : memref<16x32xf32, #tpu.memory_space<vmem>>, vector<16x32xf32>
    tpu.vector_store %arg10[%c0_20, %c0_21], %19 {strides = array<i32>} : memref<16x32xf32, #tpu.memory_space<vmem>>, vector<16x32xf32>,
    return
  }
  func.func @transform_0(%arg0: i32) -> (i32, i32) {
    %c0_i32 = arith.constant 0 : i32
    %c0_i32_0 = arith.constant 0 : i32
    return %arg0, %c0_i32 : i32, i32
  }
  func.func @transform_1(%arg0: i32) -> (i32, i32) {
    %c0_i32 = arith.constant 0 : i32
    %c0_i32_0 = arith.constant 0 : i32
    %c0_i32_1 = arith.constant 0 : i32
    return %c0_i32, %c0_i32_0 : i32, i32
  }
  func.func @transform_2(%arg0: i32) -> (i32, i32) {
    %c0_i32 = arith.constant 0 : i32
    %c0_i32_0 = arith.constant 0 : i32
    %c0_i32_1 = arith.constant 0 : i32
    return %c0_i32, %c0_i32_0 : i32, i32
  }
  func.func @transform_3(%arg0: i32) -> (i32, i32) {
    %c0_i32 = arith.constant 0 : i32
    %c0_i32_0 = arith.constant 0 : i32
    %c0_i32_1 = arith.constant 0 : i32
    return %c0_i32, %c0_i32_0 : i32, i32
  }
  func.func @transform_4(%arg0: i32) -> (i32, i32) {
    %c0_i32 = arith.constant 0 : i32
    %c0_i32_0 = arith.constant 0 : i32
    %c0_i32_1 = arith.constant 0 : i32
    return %c0_i32, %c0_i32_0 : i32, i32
  }
  func.func @transform_5(%arg0: i32) -> (i32, i32) {
    %c0_i32 = arith.constant 0 : i32
    %c0_i32_0 = arith.constant 0 : i32
    %c0_i32_1 = arith.constant 0 : i32
    return %c0_i32, %c0_i32_0 : i32, i32
  }
  func.func @transform_6(%arg0: i32) -> (i32, i32) {
    %c0_i32 = arith.constant 0 : i32
    %c0_i32_0 = arith.constant 0 : i32
    %c0_i32_1 = arith.constant 0 : i32
    return %c0_i32, %c0_i32_0 : i32, i32
  }
  func.func @transform_7(%arg0: i32) -> (i32, i32) {
    %c0_i32 = arith.constant 0 : i32
    %c0_i32_0 = arith.constant 0 : i32
    return %arg0, %c0_i32 : i32, i32
  }
  func.func @transform_8(%arg0: i32) -> (i32, i32) {
    %c0_i32 = arith.constant 0 : i32
    %c0_i32_0 = arith.constant 0 : i32
    return %arg0, %c0_i32 : i32, i32
  }
  func.func @transform_9(%arg0: i32) -> (i32, i32) {
    %c0_i32 = arith.constant 0 : i32
    %c0_i32_0 = arith.constant 0 : i32
    return %arg0, %c0_i32 : i32, i32
  }
}

</mosaic_0001>

<bundles_post_ra>
// kernel: tpu_custom_call.1
= control target key start
LH: loop header
LB: loop body
LE: loop exit
PB: predicated region body
PF: predicated region fallthrough
CT: control target
= control target key end

     0   :  { %15 = vsyncpa [#allocation3], 0  ;;  %s877_s0 = inlined_call_operand.hbm [shape: f32[16,32], index: 0, kind: input, shape index: {}]   ;;  %s878_s1 = inlined_call_operand.hbm [shape: f32[32,32], index: 1, kind: input, shape index: {}]   ;;  %s879_s2 = inlined_call_operand.vmem [shape: f32[1,32], index: 2, kind: input, shape index: {}]   ;;  %s880_s3 = inlined_call_operand.hbm [shape: f32[32,32], index: 3, kind: input, shape index: {}]   ;;  %s881_s4 = inlined_call_operand.vmem [shape: f32[1,32], index: 4, kind: input, shape index: {}]   ;;  %s882_s5 = inlined_call_operand.hbm [shape: f32[32,32], index: 5, kind: input, shape index: {}]   ;;  %s883_s6 = inlined_call_operand.vmem [shape: f32[1,32], index: 6, kind: input, shape index: {}]   ;;  %s884_s7 = inlined_call_operand.hbm [shape: f32[16,32], index: 7, kind: output, shape index: {0}]   ;;  %s885_s8 = inlined_call_operand.hbm [shape: f32[16,32], index: 8, kind: output, shape index: {1}]   ;;  %s886_s9 = inlined_call_operand.hbm [shape: f32[16,32], index: 9, kind: output, shape index: {2}]  }
   0x1   :  { %16 = vsyncpa [#allocation6], 0 }
   0x2   :  { %17 = vsyncpa [#allocation9], 0 }
   0x3   :  { %18 = vsyncpa [#allocation4], 0 }
   0x4   :  { %19 = vsyncpa [#allocation12], 0  ;;  %s668_s30 = smov [#allocation5]   ;;  %s669_s11 = smov [#allocation2]  }
   0x5   :  { %s37_s10 = sshll.u32 %s668_s30, 4  ;;  %s25_s12 = sshll.u32 %s669_s11, 4  ;;  %s38_s10 = int_to_ptr.vmem [resolvable:$true] %s37_s10  ;;  %s727_s12 = int_to_ptr.vmem [resolvable:$true] %s25_s12 }
   0x6   :  { %s504_s15 = scalar_lea.hbm %s878_s1, 512 }
   0x7   :  { %p505_p0 = scmp.ne.s32.totalorder %s878_s1, %s504_s15  ;;  %p508_p1 = scmp.lt.u32.totalorder %s504_s15, %s878_s1 }
   0x9   :  { %p510_p2 = pnand %p508_p1, %p505_p0 }
   0xb   :  { %513 = shalt.err (!%p510_p2)
}
   0xc   :  { %s514_s20 = scalar_lea.vmem %s38_s10, 512  ;;  %p519_p4 = scmp.lt.s32.totalorder %s38_s10, %s38_s10 }
   0xd   :  { %p515_p3 = scmp.ne.s32.totalorder %s38_s10, %s514_s20  ;;  %p520_p5 = scmp.lt.s32.totalorder %s514_s20, %s514_s20 }
   0xf   :  { %p521_p6 = por %p520_p5, %p519_p4 }
  0x11   :  { %p522_p7 = pnand %p521_p6, %p515_p3 }
  0x13   :  { %525 = shalt.err (!%p522_p7)
}
  0x14   :  { %s670_s21 = smov 128   ;;  %s671_s22 = smov 8  }
  0x15   :  { %43 = dma.hbm_to_vmem [thread:$0]  %s878_s1, 512, %s38_s10, [#allocation6], %s670_s21, %s670_s21, %s671_s22  }
  0x16   :  { %s526_s27 = scalar_lea.hbm %s877_s0, 256 }
  0x17   :  { %p527_p8 = scmp.ne.s32.totalorder %s877_s0, %s526_s27  ;;  %p530_p9 = scmp.lt.u32.totalorder %s526_s27, %s877_s0 }
  0x19   :  { %p532_p10 = pnand %p530_p9, %p527_p8 }
  0x1b   :  { %535 = shalt.err (!%p532_p10)
}
  0x1c   :  { %s536_s13 = scalar_lea.vmem %s727_s12, 256  ;;  %p541_p12 = scmp.lt.s32.totalorder %s727_s12, %s727_s12 }
  0x1d   :  { %p537_p11 = scmp.ne.s32.totalorder %s727_s12, %s536_s13  ;;  %p542_p13 = scmp.lt.s32.totalorder %s536_s13, %s536_s13 }
  0x1f   :  { %p543_p0 = por %p542_p13, %p541_p12 }
  0x21   :  { %p544_p1 = pnand %p543_p0, %p537_p11 }
  0x23   :  { %547 = shalt.err (!%p544_p1)
}
  0x24   :  { %31 = dma.hbm_to_vmem [thread:$0]  %s877_s0, 256, %s727_s12, [#allocation3], %s670_s21, %s670_s21, %s671_s22  }
  0x25   :  { %s672_s14 = smov [#allocation7]   ;;  %s673_s16 = smov [#allocation8]  }
  0x26   :  { %s51_s15 = sshll.u32 %s672_s14, 4  ;;  %s65_s17 = sshll.u32 %s673_s16, 4  ;;  %s52_s15 = int_to_ptr.vmem [resolvable:$true] %s51_s15  ;;  %s764_s17 = int_to_ptr.vmem [resolvable:$true] %s65_s17 }
  0x27   :  { %s548_s20 = scalar_lea.hbm %s880_s3, 512 }
  0x28   :  { %p549_p2 = scmp.ne.s32.totalorder %s880_s3, %s548_s20  ;;  %p552_p3 = scmp.lt.u32.totalorder %s548_s20, %s880_s3 }
  0x2a   :  { %p554_p4 = pnand %p552_p3, %p549_p2 }
  0x2c   :  { %557 = shalt.err (!%p554_p4)
}
  0x2d   :  { %s558_s0 = scalar_lea.vmem %s52_s15, 512  ;;  %p563_p6 = scmp.lt.s32.totalorder %s52_s15, %s52_s15 }
  0x2e   :  { %p559_p5 = scmp.ne.s32.totalorder %s52_s15, %s558_s0  ;;  %p564_p7 = scmp.lt.s32.totalorder %s558_s0, %s558_s0 }
  0x30   :  { %p565_p8 = por %p564_p7, %p563_p6 }
  0x32   :  { %p566_p9 = pnand %p565_p8, %p559_p5 }
  0x34   :  { %569 = shalt.err (!%p566_p9)
}
  0x35   :  { %57 = dma.hbm_to_vmem [thread:$0]  %s880_s3, 512, %s52_s15, [#allocation6], %s670_s21, %s670_s21, %s671_s22  }
  0x36   :  { %s570_s30 = scalar_lea.hbm %s882_s5, 512 }
  0x37   :  { %p571_p10 = scmp.ne.s32.totalorder %s882_s5, %s570_s30  ;;  %p574_p11 = scmp.lt.u32.totalorder %s570_s30, %s882_s5 }
  0x39   :  { %p576_p12 = pnand %p574_p11, %p571_p10 }
  0x3b   :  { %579 = shalt.err (!%p576_p12)
}
  0x3c   :  { %s580_s14 = scalar_lea.vmem %s764_s17, 512  ;;  %p585_p0 = scmp.lt.s32.totalorder %s764_s17, %s764_s17 }
  0x3d   :  { %p581_p13 = scmp.ne.s32.totalorder %s764_s17, %s580_s14  ;;  %p586_p1 = scmp.lt.s32.totalorder %s580_s14, %s580_s14 }
  0x3f   :  { %p587_p2 = por %p586_p1, %p585_p0 }
  0x41   :  { %p588_p3 = pnand %p587_p2, %p581_p13 }
  0x43   :  { %591 = shalt.err (!%p588_p3)
}
  0x44   :  { %71 = dma.hbm_to_vmem [thread:$0]  %s882_s5, 512, %s764_s17, [#allocation9], %s670_s21, %s670_s21, %s671_s22  }
  0x45   :  { %658 = dma.done.wait [#allocation3], 256  }
  0x46   :  { %659 = vsyncadd [#allocation3], 4294967040 }
  0x47   :  { %660 = dma.done.wait [#allocation6], 1024  }
  0x48   :  { %661 = vsyncadd [#allocation6], 4294966272 }
  0x49   :  { %662 = dma.done.wait [#allocation9], 512  }
  0x4a   :  { %663 = vsyncadd [#allocation9], 4294966784  ;;  %v88_v0 = vld [vmem:[#allocation5] sm:$0xff]  ;;  %v89_v1 = vld [vmem:[#allocation5 + $0x8] sm:$0xff]  ;;  %vm99_vm0 = vcmask 261120   ;;  %s674_s19 = smov [#allocation11]  }
  0x4b   :  { %v90_v2 = vld [vmem:[#allocation5 + $0x10] sm:$0xff]  ;;  %v471_v3 = vpack.c.bf16 %v89_v1, %v88_v0  ;;  %v91_v4 = vld [vmem:[#allocation5 + $0x18] sm:$0xff]  ;;  %v185_v5 = vld [vmem:[#allocation7] sm:$0xff]  ;;  %s378_s20 = sshll.u32 %s674_s19, 4  ;;  %s675_s23 = smov [#allocation10]   ;;  %s379_s20 = int_to_ptr.vmem [resolvable:$true] %s378_s20 }
  0x4c   :  { %v186_v6 = vld [vmem:[#allocation7 + $0x8] sm:$0xff]  ;;  %v475_v7 = vpack.c.bf16 %v91_v4, %v90_v2  ;;  %v86_v9 = vld [vmem:[#allocation2] sm:$0xff]  ;;  %v273_v10 = vld [vmem:[#allocation8] sm:$0xff]  ;;  %s366_s24 = sshll.u32 %s675_s23, 4  ;;  %s676_s25 = smov [#allocation13]   ;;  %s814_s24 = int_to_ptr.vmem [resolvable:$true] %s366_s24 }
  0x4d   :  { %v479_v8 = vpack.c.bf16 %v186_v6, %v185_v5  ;;  %472 = vmatprep.subr.bf16.mxu0 %v471_v3  ;;  %446 = vmatprep.mubr.msk.f32.mxu0 %vm99_vm0, %v86_v9  ;;  %v274_v11 = vld [vmem:[#allocation8 + $0x8] sm:$0xff]  ;;  %v187_v12 = vld [vmem:[#allocation7 + $0x10] sm:$0xff]  ;;  %v188_v13 = vld [vmem:[#allocation7 + $0x18] sm:$0xff]  ;;  %s821_s26 = sshll.u32 %s676_s25, 4  ;;  %s592_s0 = scalar_lea.vmem %s379_s20, 256  ;;  %s391_s26 = int_to_ptr.vmem [resolvable:$true] %s821_s26 }
  0x4e   :  { %474 = vmatpush3.bf16.msra.mxu0 %v471_v3  ;;  %v483_v14 = vpack.c.bf16 %v188_v13, %v187_v12  ;;  %v487_v15 = vpack.c.bf16 %v274_v11, %v273_v10  ;;  %v275_v16 = vld [vmem:[#allocation8 + $0x10] sm:$0xff]  ;;  %v276_v17 = vld [vmem:[#allocation8 + $0x18] sm:$0xff]  ;;  %457 = vmatprep.mubr.msk.f32.mxu1 %vm99_vm0, %v86_v9  ;;  %p593_p4 = scmp.ne.s32.totalorder %s379_s20, %s592_s0  ;;  %p597_p5 = scmp.lt.s32.totalorder %s379_s20, %s379_s20 }
  0x4f   :  { %480 = vmatprep.subr.bf16.mxu1 %v479_v8  ;;  %476 = vmatprep.subr.bf16.mxu0 %v475_v7  ;;  %v87_v18 = vld [vmem:[#allocation2 + $0x8] sm:$0xff]  ;;  %v491_v19 = vpack.c.bf16 %v276_v17, %v275_v16  ;;  %v411_v20 = vld [vmem:[%s879_s2] ss:$0 sm:$0xff]  ;;  %p598_p6 = scmp.lt.s32.totalorder %s592_s0, %s592_s0 }
  0x50   :  { %482 = vmatpush3.bf16.msra.mxu1 %v479_v8  ;;  %v414_v21 = vld [vmem:[%s881_s4] ss:$0 sm:$0xff] }
  0x51   :  { %484 = vmatprep.subr.bf16.mxu1 %v483_v14  ;;  %v417_v32 = vld [vmem:[%s883_s6] ss:$0 sm:$0xff]  ;;  %p599_p7 = por %p598_p6, %p597_p5 }
  0x52   :  { %478 = vmatpush3.bf16.msra.mxu0 %v475_v7 }
  0x53   :  { %488 = vmatprep.subr.bf16.mxu0 %v487_v15  ;;  %p600_p8 = pnand %p599_p7, %p593_p4 }
  0x54   :  { %486 = vmatpush3.bf16.msra.mxu1 %v483_v14 }
  0x55   :  { %447 = vmatmul.mubr.msk.f32.vlgmr.msra.gmra.mrb[0].mxu0 %vm99_vm0, %v87_v18 }
  0x56   :  { %490 = vmatpush3.bf16.msra.mxu0 %v487_v15  ;;  %468 = vmatprep.mubr.msk.f32.mxu0 %vm99_vm0, %v86_v9 }
  0x57   :  { %458 = vmatmul.mubr.msk.f32.vlgmr.msra.gmra.mrb[0].mxu1 %vm99_vm0, %v87_v18  ;;  %492 = vmatprep.subr.bf16.mxu0 %v491_v19 }
  0x5a   :  { %494 = vmatpush3.bf16.msra.mxu0 %v491_v19 }
  0x5d   :  { %469 = vmatmul.mubr.msk.f32.vlgmr.msra.gmra.mrb[2].mxu0 %vm99_vm0, %v87_v18 }
 0x128   :  { %v448_v22 = vpop.f32.mrb[0].mxu0 }
 0x129   :  { %v178_v23 = vadd.f32 %v448_v22, %v411_v20  ;;  %v172_v24 = vpop.f32.mrb[1].mxu0 }
 0x12a   :  { %v459_v25 = vpop.f32.mrb[0].mxu1  ;;  %v173_v26 = vadd.f32 %v411_v20, %v172_v24 }
 0x12b   :  { %v268_v27 = vadd.f32 %v459_v25, %v414_v21  ;;  %v262_v28 = vpop.f32.mrb[1].mxu1  ;;  %v182_v29 = vmul.f32 0.35355338, %v178_v23 }
 0x12c   :  { %v263_v30 = vadd.f32 %v414_v21, %v262_v28  ;;  %v181_v31 = vmul.f32 0.35355338, %v173_v26 }
 0x12d   :  { %272 = vst.msk [vmem:[#allocation11 + $0x8] sm:$0xff] %vm99_vm0, %v268_v27  ;;  %184 = vst.msk [vmem:[#allocation10 + $0x8] sm:$0xff] %vm99_vm0, %v182_v29 }
 0x12e   :  { %271 = vst.msk [vmem:[#allocation11] sm:$0xff] %vm99_vm0, %v263_v30  ;;  %183 = vst.msk [vmem:[#allocation10] sm:$0xff] %vm99_vm0, %v181_v31 }
 0x12f   :  { %603 = shalt.err (!%p600_p8)
}
 0x130   :  { %s604_s28 = scalar_lea.hbm %s885_s8, 256 }
 0x131   :  { %p605_p9 = scmp.ne.s32.totalorder %s885_s8, %s604_s28  ;;  %p608_p10 = scmp.lt.u32.totalorder %s604_s28, %s885_s8 }
 0x133   :  { %p610_p11 = pnand %p608_p10, %p605_p9 }
 0x135   :  { %613 = shalt.err (!%p610_p11)
}
 0x136   :  { %384 = dma.vmem_to_hbm [thread:$0]  %s379_s20, 256, %s885_s8, [#allocation12], %s670_s21, %s670_s21, %s671_s22  }
 0x137   :  { %s614_s10 = scalar_lea.vmem %s814_s24, 256  ;;  %p619_p13 = scmp.lt.s32.totalorder %s814_s24, %s814_s24 }
 0x138   :  { %p615_p12 = scmp.ne.s32.totalorder %s814_s24, %s614_s10  ;;  %p620_p0 = scmp.lt.s32.totalorder %s614_s10, %s614_s10 }
 0x13a   :  { %p621_p1 = por %p620_p0, %p619_p13 }
 0x13c   :  { %p622_p2 = pnand %p621_p1, %p615_p12 }
 0x13e   :  { %625 = shalt.err (!%p622_p2)
}
 0x13f   :  { %s626_s15 = scalar_lea.hbm %s884_s7, 256 }
 0x140   :  { %p627_p3 = scmp.ne.s32.totalorder %s884_s7, %s626_s15  ;;  %p630_p4 = scmp.lt.u32.totalorder %s626_s15, %s884_s7 }
 0x142   :  { %p632_p5 = pnand %p630_p4, %p627_p3 }
 0x144   :  { %635 = shalt.err (!%p632_p5)
}
 0x145   :  { %372 = dma.vmem_to_hbm [thread:$0]  %s814_s24, 256, %s884_s7, [#allocation4], %s670_s21, %s670_s21, %s671_s22   ;;  %v470_v33 = vpop.f32.mrb[2].mxu0 }
 0x146   :  { %v356_v34 = vadd.f32 %v470_v33, %v417_v32  ;;  %v350_v35 = vpop.f32.mrb[3].mxu0  ;;  %s636_s20 = scalar_lea.vmem %s391_s26, 256  ;;  %p641_p7 = scmp.lt.s32.totalorder %s391_s26, %s391_s26 }
 0x147   :  { %v351_v36 = vadd.f32 %v417_v32, %v350_v35  ;;  %p637_p6 = scmp.ne.s32.totalorder %s391_s26, %s636_s20  ;;  %p642_p8 = scmp.lt.s32.totalorder %s636_s20, %s636_s20 }
 0x148   :  { %360 = vst.msk [vmem:[#allocation13 + $0x8] sm:$0xff] %vm99_vm0, %v356_v34 }
 0x149   :  { %359 = vst.msk [vmem:[#allocation13] sm:$0xff] %vm99_vm0, %v351_v36  ;;  %p643_p9 = por %p642_p8, %p641_p7 }
 0x14b   :  { %p644_p10 = pnand %p643_p9, %p637_p6 }
 0x14d   :  { %647 = shalt.err (!%p644_p10)
}
 0x14e   :  { %s648_s7 = scalar_lea.hbm %s886_s9, 256 }
 0x14f   :  { %p649_p11 = scmp.ne.s32.totalorder %s886_s9, %s648_s7  ;;  %p652_p12 = scmp.lt.u32.totalorder %s648_s7, %s886_s9 }
 0x151   :  { %p654_p13 = pnand %p652_p12, %p649_p11 }
 0x153   :  { %657 = shalt.err (!%p654_p13)
}
 0x154   :  { %396 = dma.vmem_to_hbm [thread:$0]  %s391_s26, 256, %s886_s9, [#allocation12], %s670_s21, %s670_s21, %s671_s22  }
 0x155   :  { %664 = dma.done.wait [#allocation4], 256  }
 0x156   :  { %665 = vsyncadd [#allocation4], 4294967040 }
 0x157   :  { %666 = dma.done.wait [#allocation12], 512  }
 0x158   :  { %667 = vsyncadd [#allocation12], 4294966784 }
 0x159   :  { %406 = vsyncpa [#allocation3], 1 }
 0x15a   :  { %407 = vsyncpa [#allocation6], 1 }
 0x15b   :  { %408 = vsyncpa [#allocation9], 1 }
 0x15c   :  { %409 = vsyncpa [#allocation4], 1 }
 0x15d   :  { %410 = vsyncpa [#allocation12], 1 }

</bundles_post_ra>
